<compile_context>
chip_gen: v7x
topology: tpu7x:2x2x1
jax: 0.10.0
libtpu: 0.0.40
codegen_flags: <defaults>
</compile_context>

<pallas_src>
import math

import jax
import jax.numpy as jnp
from jax.experimental import pallas as pl
from jax.experimental.pallas import tpu as pltpu

LANES = 128
SUBLANES = 8


def _round_up(x, m):
    return ((x + m - 1) // m) * m


def _softplus_inv(y):
    # inverse of softplus: log(exp(y) - 1) = y + log1p(-exp(-y)); stable y > 0
    assert y > 0.0, "prior_std must be > 0"
    return y + math.log1p(-math.exp(-y))


def _vmem_capacity_bytes():
    try:
        return int(pltpu.get_tpu_info().vmem_capacity_bytes)
    except Exception:
        return 64 << 20  # conservative fallback (v7x per-core VMEM)


# -----------------------------------------------------------------------------
# Pallas kernel
# -----------------------------------------------------------------------------
def _make_elbo_kernel(*, prior_std: float, kl_weight: float, batch: int):
    inv_two_var = 1.0 / (2.0 * prior_std * prior_std)
    inv_batch = 1.0 / float(batch)
    # Per-element constant of the Gaussian KL; folding it in per element makes
    # the KL-neutral padding contribute ~0 independent of pad count.
    kl_const = math.log(prior_std) - 0.5

    def kernel(pred_ref, tgt_ref, mu_ref, rho_ref, out_ref, acc_ref):
        # out_ref: SMEM (1, 8): [0,0]=loss  [0,1]=nll  [0,2]=kl
        # acc_ref: VMEM (8, 128) f32 KL partial-sum accumulator (persists).
        i = pl.program_id(0)

        @pl.when(i == 0)
        def _init():
            acc_ref[...] = jnp.zeros_like(acc_ref)
            # NLL = MSE(reduction='sum') / batch. Zero padding of the pred/tgt
            # slabs is exactly neutral (diff == 0). One-time cross-lane reduce.
            diff = pred_ref[...] - tgt_ref[...]
            out_ref[0, 1] = jnp.sum(diff * diff) * jnp.float32(inv_batch)
            for j in (0, 2, 3, 4, 5, 6, 7):
                out_ref[0, j] = jnp.float32(0.0)

        # --- KL(N(mu, softplus(rho)) || N(0, prior_std)) on this row chunk ---
        mu = mu_ref[...]
        rho = rho_ref[...]
        # numerically stable softplus (avoids exp overflow for large rho)
        sigma = jnp.maximum(rho, 0.0) + jnp.log1p(jnp.exp(-jnp.abs(rho)))
        kl_elem = ((sigma * sigma + mu * mu) * jnp.float32(inv_two_var)
                   - jnp.log(sigma) + jnp.float32(kl_const))
        # Accumulate into the (8,128) vreg-shaped scratch with pure VPU adds:
        # the reshape only splits the sublane axis (layout preserving), so the
        # grid-serial chain has no XLU reduce and no SMEM scalar round-trip.
        rows = kl_elem.shape[0]
        acc_ref[...] += jnp.sum(
            kl_elem.reshape(rows // SUBLANES, SUBLANES, LANES), axis=0)

        @pl.when(i == pl.num_programs(0) - 1)
        def _finalize():
            kl = jnp.sum(acc_ref[...])  # single cross-lane reduce, once
            out_ref[0, 2] = kl
            out_ref[0, 0] = out_ref[0, 1] + jnp.float32(kl_weight) * kl

    return kernel


# -----------------------------------------------------------------------------
# Wrapper
# -----------------------------------------------------------------------------
def _to_lane_slab(x, fill=0.0):
    """Flatten to 1-D, pad to lane-dense (rows, 128) with rows % 8 == 0."""
    flat = jnp.ravel(x).astype(jnp.float32)
    n = int(flat.shape[0])
    n_pad = _round_up(max(n, 1), SUBLANES * LANES)
    flat = jnp.pad(flat, (0, n_pad - n), constant_values=fill)
    return flat.reshape(n_pad // LANES, LANES)


def pack_param_pairs(param_pairs):
    """Concatenate all (mu, rho) tensors into two flat f32 vectors."""
    mu_flat = jnp.concatenate(
        [jnp.ravel(m) for m, _ in param_pairs]).astype(jnp.float32)
    rho_flat = jnp.concatenate(
        [jnp.ravel(r) for _, r in param_pairs]).astype(jnp.float32)
    return mu_flat, rho_flat


def elbo_loss_pallas(predictions, targets, param_pairs, *,
                     prior_std=1.0, kl_weight=0.01, chunk_rows=2048):
    """param_pairs: list of (mu, rho) float32 arrays (any shapes)."""
    assert prior_std > 0.0, "prior_std must be positive"
    batch = int(targets.shape[0])

    # ---- lane-dense predictions / targets slabs (zero pad is NLL-neutral) ---
    pred_slab = _to_lane_slab(predictions)
    tgt_slab = _to_lane_slab(targets)
    io_bytes = (pred_slab.size + tgt_slab.size) * 4  # single-buffered

    # ---- pack variational params into two lane-dense (rows, 128) slabs ------
    mu_flat, rho_flat = pack_param_pairs(param_pairs)
    n_valid = int(mu_flat.shape[0])
    rows8 = _round_up(max(1, -(-n_valid // LANES)), SUBLANES)

    # ---- tile size: large enough to hide per-step overhead, VMEM-clamped ----
    vmem_cap = _vmem_capacity_bytes()
    budget = int(0.45 * vmem_cap)  # leave headroom for XLA + temporaries
    scratch_bytes = SUBLANES * LANES * 4
    avail = budget - io_bytes - scratch_bytes - (4 << 20)
    bytes_per_chunk_row = 2 * 2 * LANES * 4  # mu+rho slabs, double-buffered
    max_chunk = max(SUBLANES,
                    (avail // bytes_per_chunk_row) // SUBLANES * SUBLANES)
    chunk = _round_up(min(chunk_rows, rows8), SUBLANES)
    chunk = max(SUBLANES, min(chunk, max_chunk))

    rows_padded = _round_up(rows8, chunk)
    num_chunks = rows_padded // chunk
    n_total = rows_padded * LANES
    pad = n_total - n_valid

    # KL-neutral padding: mu = 0, sigma = prior_std  =>  per-element KL ~= 0
    rho_pad = _softplus_inv(prior_std)
    mu_slab = jnp.pad(mu_flat, (0, pad)).reshape(rows_padded, LANES)
    rho_slab = jnp.pad(rho_flat, (0, pad),
                       constant_values=rho_pad).reshape(rows_padded, LANES)

    kernel = _make_elbo_kernel(prior_std=prior_std, kl_weight=kl_weight,
                               batch=batch)

    # VMEM budget from the actual footprint; clamp to the chip's capacity.
    tile_bytes = chunk * LANES * 4
    vmem_limit = int(min(
        4 * tile_bytes          # mu + rho tiles, double-buffered
        + 3 * tile_bytes        # elementwise temporaries headroom
        + io_bytes              # pred/tgt slabs, single-buffered
        + scratch_bytes
        + (4 << 20),
        0.9 * vmem_cap))

    grid_spec = pltpu.PrefetchScalarGridSpec(
        num_scalar_prefetch=0,
        grid=(num_chunks,),
        in_specs=[
            pl.BlockSpec(pred_slab.shape, lambda i: (0, 0),
                         pipeline_mode=pl.Buffered(1)),
            pl.BlockSpec(tgt_slab.shape, lambda i: (0, 0),
                         pipeline_mode=pl.Buffered(1)),
            pl.BlockSpec((chunk, LANES), lambda i: (i, 0)),
            pl.BlockSpec((chunk, LANES), lambda i: (i, 0)),
        ],
        out_specs=pl.BlockSpec((1, 8), lambda i: (0, 0),
                               memory_space=pltpu.MemorySpace.SMEM),
        scratch_shapes=[pltpu.VMEM((SUBLANES, LANES), jnp.float32)],
    )

    out = pl.pallas_call(
        kernel,
        out_shape=jax.ShapeDtypeStruct((1, 8), jnp.float32),
        grid_spec=grid_spec,
        compiler_params=pltpu.CompilerParams(
            dimension_semantics=("arbitrary",),
            vmem_limit_bytes=vmem_limit,
        ),
    )(pred_slab, tgt_slab, mu_slab, rho_slab)

    loss = out[0, 0]
    nll = out[0, 1]
    kl = out[0, 2]
    components = {"nll": nll, "kl": kl, "scaled_kl": kl_weight * kl,
                  "total": loss}
    return loss, components


# -----------------------------------------------------------------------------
# Deterministic "Bayesian MLP" parameter setup (plain JAX glue)
# -----------------------------------------------------------------------------
def xavier_normal(key, out_f, in_f):
    std = math.sqrt(2.0 / (in_f + out_f))
    return jax.random.normal(key, (out_f, in_f), dtype=jnp.float32) * std


def make_variational_linear(key, in_f, out_f):
    w_mu = xavier_normal(key, out_f, in_f)
    w_rho = jnp.full((out_f, in_f), -5.0, dtype=jnp.float32)
    b_mu = jnp.zeros((1, out_f), dtype=jnp.float32)
    b_rho = jnp.full((1, out_f), -5.0, dtype=jnp.float32)
    return {"w_mu": w_mu, "w_rho": w_rho, "b_mu": b_mu, "b_rho": b_rho}


def mean_forward(x, layers):
    """Deterministic forward with posterior means (sample=False path)."""
    # TODO(synk): the sample=True reparameterized forward is stochastic glue
    # and stays in JAX; only the ELBO loss hot path is a Pallas kernel.
    h = x
    for i, layer in enumerate(layers):
        h = h @ layer["w_mu"].T + layer["b_mu"][0]
        if i < len(layers) - 1:
            h = jax.nn.relu(h)
    return h


# -----------------------------------------------------------------------------
# Pure-JAX reference for verification
# -----------------------------------------------------------------------------
def elbo_loss_ref(predictions, targets, param_pairs, prior_std, kl_weight):
    batch = targets.shape[0]
    nll = jnp.sum((predictions - targets) ** 2) / batch
    kl = 0.0
    for mu, rho in param_pairs:
        sigma = jax.nn.softplus(rho)
        kl_elem = (math.log(prior_std) - jnp.log(sigma)
                   + (sigma ** 2 + mu ** 2) / (2.0 * prior_std ** 2) - 0.5)
        kl = kl + jnp.sum(kl_elem)
    return nll + kl_weight * kl, nll, kl


if __name__ == "__main__":
    key = jax.random.PRNGKey(0)
    k1, k2, kx, kt = jax.random.split(key, 4)

    # Small BNN: 16 -> 32 -> 8, batch 8, dataset_size 100
    in_dim, hidden_dim, out_dim, batch = 16, 32, 8, 8
    dataset_size = 100
    prior_std = 1.0                      # Normal(0, prior_variance=1.0) scale
    kl_weight = 1.0 / dataset_size

    layer1 = make_variational_linear(k1, in_dim, hidden_dim)
    layer2 = make_variational_linear(k2, hidden_dim, out_dim)
    layers = [layer1, layer2]

    x = jax.random.normal(kx, (batch, in_dim), dtype=jnp.float32)
    targets = jax.random.normal(kt, (batch, out_dim), dtype=jnp.float32)
    predictions = mean_forward(x, layers)

    # (mu, rho) pairs for every variational parameter tensor
    param_pairs = []
    for layer in layers:
        param_pairs.append((layer["w_mu"], layer["w_rho"]))
        param_pairs.append((layer["b_mu"], layer["b_rho"]))

    loss, comps = elbo_loss_pallas(predictions, targets, param_pairs,
                                   prior_std=prior_std, kl_weight=kl_weight)
    loss = jax.block_until_ready(loss)

    # verify against pure-JAX reference
    ref_loss, ref_nll, ref_kl = elbo_loss_ref(
        predictions, targets, param_pairs, prior_std, kl_weight)
    assert jnp.allclose(loss, ref_loss, rtol=1e-5, atol=1e-4), (loss, ref_loss)
    assert jnp.allclose(comps["nll"], ref_nll, rtol=1e-5, atol=1e-4)
    assert jnp.allclose(comps["kl"], ref_kl, rtol=1e-5, atol=1e-4)

    print("KERNEL_OK")
</pallas_src>

<mosaic_0001>
module attributes {stable_mosaic.version = 11 : i64} {
  func.func @kernel(%arg0: i32, %arg1: memref<8x128xf32, #tpu.memory_space<vmem>>, %arg2: memref<8x128xf32, #tpu.memory_space<vmem>>, %arg3: memref<8x128xf32, #tpu.memory_space<vmem>>, %arg4: memref<8x128xf32, #tpu.memory_space<vmem>>, %arg5: memref<1x8xf32, #tpu.memory_space<smem>>, %arg6: memref<8x128xf32, #tpu.memory_space<vmem>>) attributes {dimension_semantics = [#tpu.dimension_semantics<arbitrary>], iteration_bounds = array<i64: 1>, scalar_prefetch = 0 : i64, scratch_operands = 1 : i64, tpu.core_type = #tpu.core_type<tc>, window_params = [{pipeline_mode = #tpu.pipeline_mode<synchronous>, transform_indices = @transform_0, window_bounds = array<i64: 8, 128>}, {pipeline_mode = #tpu.pipeline_mode<synchronous>, transform_indices = @transform_1, window_bounds = array<i64: 8, 128>}, {transform_indices = @transform_2, window_bounds = array<i64: 8, 128>}, {transform_indices = @transform_3, window_bounds = array<i64: 8, 128>}, {transform_indices = @transform_4, window_bounds = array<i64: 1, 8>}]} {
    %c0_i32 = arith.constant 0 : i32
    %0 = arith.cmpi eq, %arg0, %c0_i32 : i32
    %1 = arith.extui %0 : i1 to i32
    %c0_i32_0 = arith.constant 0 : i32
    %2 = arith.cmpi ne, %1, %c0_i32_0 : i32
    scf.if %2 {
      %cst_14 = arith.constant 0.000000e+00 : f32
      %30 = vector.broadcast %cst_14 : f32 to vector<8x128xf32>
      %c0_15 = arith.constant 0 : index
      %c0_16 = arith.constant 0 : index
      %31 = vector.load %arg6[%c0_15, %c0_16] : memref<8x128xf32, #tpu.memory_space<vmem>>, vector<8x128xf32>
      tpu.vector_store %arg6[%c0_15, %c0_16], %30 {strides = array<i32>} : memref<8x128xf32, #tpu.memory_space<vmem>>, vector<8x128xf32>,
      %c0_17 = arith.constant 0 : index
      %c0_18 = arith.constant 0 : index
      %32 = vector.load %arg1[%c0_17, %c0_18] : memref<8x128xf32, #tpu.memory_space<vmem>>, vector<8x128xf32>
      %c0_19 = arith.constant 0 : index
      %c0_20 = arith.constant 0 : index
      %33 = vector.load %arg2[%c0_19, %c0_20] : memref<8x128xf32, #tpu.memory_space<vmem>>, vector<8x128xf32>
      %34 = arith.subf %32, %33 : vector<8x128xf32>
      %35 = arith.mulf %34, %34 : vector<8x128xf32>
      %36 = vector.shape_cast %35 : vector<8x128xf32> to vector<1x8x128xf32>
      %cst_21 = arith.constant dense<0.000000e+00> : vector<1xf32>
      %37 = vector.multi_reduction <add>, %36, %cst_21 [1, 2] : vector<1x8x128xf32> to vector<1xf32>
      %38 = vector.shape_cast %37 : vector<1xf32> to vector<1x1x1xf32>
      %39 = vector.extract %38[0, 0, 0] : f32 from vector<1x1x1xf32>
      %cst_22 = arith.constant 1.250000e-01 : f32
      %40 = arith.mulf %39, %cst_22 : f32
      %c0_23 = arith.constant 0 : index
      %c1 = arith.constant 1 : index
      %41 = memref.load %arg5[%c0_23, %c1] : memref<1x8xf32, #tpu.memory_space<smem>>
      memref.store %40, %arg5[%c0_23, %c1] : memref<1x8xf32, #tpu.memory_space<smem>>
      %cst_24 = arith.constant 0.000000e+00 : f32
      %c0_25 = arith.constant 0 : index
      %c0_26 = arith.constant 0 : index
      %42 = memref.load %arg5[%c0_25, %c0_26] : memref<1x8xf32, #tpu.memory_space<smem>>
      memref.store %cst_24, %arg5[%c0_25, %c0_26] : memref<1x8xf32, #tpu.memory_space<smem>>
      %cst_27 = arith.constant 0.000000e+00 : f32
      %c0_28 = arith.constant 0 : index
      %c2 = arith.constant 2 : index
      %43 = memref.load %arg5[%c0_28, %c2] : memref<1x8xf32, #tpu.memory_space<smem>>
      memref.store %cst_27, %arg5[%c0_28, %c2] : memref<1x8xf32, #tpu.memory_space<smem>>
      %cst_29 = arith.constant 0.000000e+00 : f32
      %c0_30 = arith.constant 0 : index
      %c3 = arith.constant 3 : index
      %44 = memref.load %arg5[%c0_30, %c3] : memref<1x8xf32, #tpu.memory_space<smem>>
      memref.store %cst_29, %arg5[%c0_30, %c3] : memref<1x8xf32, #tpu.memory_space<smem>>
      %cst_31 = arith.constant 0.000000e+00 : f32
      %c0_32 = arith.constant 0 : index
      %c4 = arith.constant 4 : index
      %45 = memref.load %arg5[%c0_32, %c4] : memref<1x8xf32, #tpu.memory_space<smem>>
      memref.store %cst_31, %arg5[%c0_32, %c4] : memref<1x8xf32, #tpu.memory_space<smem>>
      %cst_33 = arith.constant 0.000000e+00 : f32
      %c0_34 = arith.constant 0 : index
      %c5 = arith.constant 5 : index
      %46 = memref.load %arg5[%c0_34, %c5] : memref<1x8xf32, #tpu.memory_space<smem>>
      memref.store %cst_33, %arg5[%c0_34, %c5] : memref<1x8xf32, #tpu.memory_space<smem>>
      %cst_35 = arith.constant 0.000000e+00 : f32
      %c0_36 = arith.constant 0 : index
      %c6 = arith.constant 6 : index
      %47 = memref.load %arg5[%c0_36, %c6] : memref<1x8xf32, #tpu.memory_space<smem>>
      memref.store %cst_35, %arg5[%c0_36, %c6] : memref<1x8xf32, #tpu.memory_space<smem>>
      %cst_37 = arith.constant 0.000000e+00 : f32
      %c0_38 = arith.constant 0 : index
      %c7 = arith.constant 7 : index
      %48 = memref.load %arg5[%c0_38, %c7] : memref<1x8xf32, #tpu.memory_space<smem>>
      memref.store %cst_37, %arg5[%c0_38, %c7] : memref<1x8xf32, #tpu.memory_space<smem>>
    } else {
    }
    %c0 = arith.constant 0 : index
    %c0_1 = arith.constant 0 : index
    %3 = vector.load %arg3[%c0, %c0_1] : memref<8x128xf32, #tpu.memory_space<vmem>>, vector<8x128xf32>
    %c0_2 = arith.constant 0 : index
    %c0_3 = arith.constant 0 : index
    %4 = vector.load %arg4[%c0_2, %c0_3] : memref<8x128xf32, #tpu.memory_space<vmem>>, vector<8x128xf32>
    %cst = arith.constant 0.000000e+00 : f32
    %5 = vector.broadcast %cst : f32 to vector<8x128xf32>
    %6 = arith.maximumf %4, %5 : vector<8x128xf32>
    %7 = math.absf %4 : vector<8x128xf32>
    %cst_4 = arith.constant 0.000000e+00 : f32
    %8 = vector.broadcast %cst_4 : f32 to vector<8x128xf32>
    %9 = arith.subf %8, %7 : vector<8x128xf32>
    %10 = math.exp %9 : vector<8x128xf32>
    %11 = math.log1p %10 : vector<8x128xf32>
    %12 = arith.addf %6, %11 : vector<8x128xf32>
    %13 = arith.mulf %12, %12 : vector<8x128xf32>
    %14 = arith.mulf %3, %3 : vector<8x128xf32>
    %15 = arith.addf %13, %14 : vector<8x128xf32>
    %cst_5 = arith.constant 5.000000e-01 : f32
    %16 = vector.broadcast %cst_5 : f32 to vector<8x128xf32>
    %17 = arith.mulf %15, %16 : vector<8x128xf32>
    %18 = math.log %12 : vector<8x128xf32>
    %19 = arith.subf %17, %18 : vector<8x128xf32>
    %cst_6 = arith.constant -5.000000e-01 : f32
    %20 = vector.broadcast %cst_6 : f32 to vector<8x128xf32>
    %21 = arith.addf %19, %20 : vector<8x128xf32>
    %c0_7 = arith.constant 0 : index
    %c0_8 = arith.constant 0 : index
    %22 = vector.load %arg6[%c0_7, %c0_8] : memref<8x128xf32, #tpu.memory_space<vmem>>, vector<8x128xf32>
    %23 = vector.shape_cast %21 : vector<8x128xf32> to vector<1x8x128xf32>
    %cst_9 = arith.constant dense<0.000000e+00> : vector<8x128xf32>
    %24 = vector.multi_reduction <add>, %23, %cst_9 [0] : vector<1x8x128xf32> to vector<8x128xf32>
    %25 = arith.addf %22, %24 : vector<8x128xf32>
    %c0_10 = arith.constant 0 : index
    %c0_11 = arith.constant 0 : index
    %26 = vector.load %arg6[%c0_10, %c0_11] : memref<8x128xf32, #tpu.memory_space<vmem>>, vector<8x128xf32>
    tpu.vector_store %arg6[%c0_10, %c0_11], %25 {strides = array<i32>} : memref<8x128xf32, #tpu.memory_space<vmem>>, vector<8x128xf32>,
    %c0_i32_12 = arith.constant 0 : i32
    %27 = arith.cmpi eq, %arg0, %c0_i32_12 : i32
    %28 = arith.extui %27 : i1 to i32
    %c0_i32_13 = arith.constant 0 : i32
    %29 = arith.cmpi ne, %28, %c0_i32_13 : i32
    scf.if %29 {
      %c0_14 = arith.constant 0 : index
      %c0_15 = arith.constant 0 : index
      %30 = vector.load %arg6[%c0_14, %c0_15] : memref<8x128xf32, #tpu.memory_space<vmem>>, vector<8x128xf32>
      %31 = vector.shape_cast %30 : vector<8x128xf32> to vector<1x8x128xf32>
      %cst_16 = arith.constant dense<0.000000e+00> : vector<1xf32>
      %32 = vector.multi_reduction <add>, %31, %cst_16 [1, 2] : vector<1x8x128xf32> to vector<1xf32>
      %33 = vector.shape_cast %32 : vector<1xf32> to vector<1x1x1xf32>
      %34 = vector.extract %33[0, 0, 0] : f32 from vector<1x1x1xf32>
      %c0_17 = arith.constant 0 : index
      %c2 = arith.constant 2 : index
      %35 = memref.load %arg5[%c0_17, %c2] : memref<1x8xf32, #tpu.memory_space<smem>>
      memref.store %34, %arg5[%c0_17, %c2] : memref<1x8xf32, #tpu.memory_space<smem>>
      %c0_18 = arith.constant 0 : index
      %c1 = arith.constant 1 : index
      %36 = memref.load %arg5[%c0_18, %c1] : memref<1x8xf32, #tpu.memory_space<smem>>
      %cst_19 = arith.constant 0.00999999977 : f32
      %37 = arith.mulf %cst_19, %34 : f32
      %38 = arith.addf %36, %37 : f32
      %c0_20 = arith.constant 0 : index
      %c0_21 = arith.constant 0 : index
      %39 = memref.load %arg5[%c0_20, %c0_21] : memref<1x8xf32, #tpu.memory_space<smem>>
      memref.store %38, %arg5[%c0_20, %c0_21] : memref<1x8xf32, #tpu.memory_space<smem>>
    } else {
    }
    return
  }
  func.func @transform_0(%arg0: i32) -> (i32, i32) {
    %c0_i32 = arith.constant 0 : i32
    %c0_i32_0 = arith.constant 0 : i32
    %c0_i32_1 = arith.constant 0 : i32
    return %c0_i32, %c0_i32_0 : i32, i32
  }
  func.func @transform_1(%arg0: i32) -> (i32, i32) {
    %c0_i32 = arith.constant 0 : i32
    %c0_i32_0 = arith.constant 0 : i32
    %c0_i32_1 = arith.constant 0 : i32
    return %c0_i32, %c0_i32_0 : i32, i32
  }
  func.func @transform_2(%arg0: i32) -> (i32, i32) {
    %c0_i32 = arith.constant 0 : i32
    %c0_i32_0 = arith.constant 0 : i32
    return %arg0, %c0_i32 : i32, i32
  }
  func.func @transform_3(%arg0: i32) -> (i32, i32) {
    %c0_i32 = arith.constant 0 : i32
    %c0_i32_0 = arith.constant 0 : i32
    return %arg0, %c0_i32 : i32, i32
  }
  func.func @transform_4(%arg0: i32) -> (i32, i32) {
    %c0_i32 = arith.constant 0 : i32
    %c0_i32_0 = arith.constant 0 : i32
    %c0_i32_1 = arith.constant 0 : i32
    return %c0_i32, %c0_i32_0 : i32, i32
  }
}

</mosaic_0001>

<bundles_post_ra>
// kernel: tpu_custom_call.1
= control target key start
LH: loop header
LB: loop body
LE: loop exit
PB: predicated region body
PF: predicated region fallthrough
CT: control target
= control target key end

     0   :  { %9 = vsyncpa [#allocation4], 0  ;;  %s331_s0 = inlined_call_operand.hbm [shape: f32[8,128], index: 0, kind: input, shape index: {}]   ;;  %s332_s1 = inlined_call_operand.hbm [shape: f32[8,128], index: 1, kind: input, shape index: {}]   ;;  %s333_s2 = inlined_call_operand.hbm [shape: f32[8,128], index: 2, kind: input, shape index: {}]   ;;  %s334_s3 = inlined_call_operand.vmem [shape: f32[8,128], index: 3, kind: input, shape index: {}]   ;;  %s335_s4 = inlined_call_operand.hbm [shape: f32[1,8], index: 4, kind: output, shape index: {}]  }
   0x1   :  { %10 = vsyncpa [#allocation7], 0 }
   0x2   :  { %11 = vsyncpa [#allocation5], 0  ;;  %s250_s15 = smov [#allocation6]   ;;  %s251_s17 = smov [#allocation3]  }
   0x3   :  { %s28_s16 = sshll.u32 %s250_s15, 4  ;;  %s18_s18 = sshll.u32 %s251_s17, 4  ;;  %s29_s16 = int_to_ptr.vmem [resolvable:$true] %s28_s16  ;;  %s19_s18 = int_to_ptr.vmem [resolvable:$true] %s18_s18 }
   0x4   :  { %s168_s21 = scalar_lea.hbm %s332_s1, 128 }
   0x5   :  { %p169_p0 = scmp.ne.s32.totalorder %s332_s1, %s168_s21  ;;  %p172_p1 = scmp.lt.u32.totalorder %s168_s21, %s332_s1 }
   0x7   :  { %p174_p2 = pnand %p172_p1, %p169_p0 }
   0x9   :  { %177 = shalt.err (!%p174_p2)
}
   0xa   :  { %s178_s26 = scalar_lea.vmem %s29_s16, 128  ;;  %p183_p4 = scmp.lt.s32.totalorder %s29_s16, %s29_s16 }
   0xb   :  { %p179_p3 = scmp.ne.s32.totalorder %s29_s16, %s178_s26  ;;  %p184_p5 = scmp.lt.s32.totalorder %s178_s26, %s178_s26 }
   0xd   :  { %p185_p6 = por %p184_p5, %p183_p4 }
   0xf   :  { %p186_p7 = pnand %p185_p6, %p179_p3 }
  0x11   :  { %189 = shalt.err (!%p186_p7)
}
  0x12   :  { %31 = dma.hbm_to_vmem [thread:$0]  %s332_s1, 128, %s29_s16, [#allocation7]  }
  0x13   :  { %s190_s5 = scalar_lea.hbm %s331_s0, 128 }
  0x14   :  { %p191_p8 = scmp.ne.s32.totalorder %s331_s0, %s190_s5  ;;  %p194_p9 = scmp.lt.u32.totalorder %s190_s5, %s331_s0 }
  0x16   :  { %p196_p10 = pnand %p194_p9, %p191_p8 }
  0x18   :  { %199 = shalt.err (!%p196_p10)
}
  0x19   :  { %s200_s10 = scalar_lea.vmem %s19_s18, 128  ;;  %p205_p12 = scmp.lt.s32.totalorder %s19_s18, %s19_s18 }
  0x1a   :  { %p201_p11 = scmp.ne.s32.totalorder %s19_s18, %s200_s10  ;;  %p206_p13 = scmp.lt.s32.totalorder %s200_s10, %s200_s10 }
  0x1c   :  { %p207_p0 = por %p206_p13, %p205_p12 }
  0x1e   :  { %p208_p1 = pnand %p207_p0, %p201_p11 }
  0x20   :  { %211 = shalt.err (!%p208_p1)
}
  0x21   :  { %21 = dma.hbm_to_vmem [thread:$0]  %s331_s0, 128, %s19_s18, [#allocation4]  }
  0x22   :  { %s252_s12 = smov [#allocation8]   ;;  %s212_s16 = scalar_lea.hbm %s333_s2, 128 }
  0x23   :  { %s38_s13 = sshll.u32 %s252_s12, 4  ;;  %p213_p2 = scmp.ne.s32.totalorder %s333_s2, %s212_s16  ;;  %s39_s13 = int_to_ptr.vmem [resolvable:$true] %s38_s13 }
  0x24   :  { %p216_p3 = scmp.lt.u32.totalorder %s212_s16, %s333_s2 }
  0x26   :  { %p218_p4 = pnand %p216_p3, %p213_p2 }
  0x28   :  { %221 = shalt.err (!%p218_p4)
}
  0x29   :  { %s222_s22 = scalar_lea.vmem %s39_s13, 128  ;;  %p227_p6 = scmp.lt.s32.totalorder %s39_s13, %s39_s13 }
  0x2a   :  { %p223_p5 = scmp.ne.s32.totalorder %s39_s13, %s222_s22  ;;  %p228_p7 = scmp.lt.s32.totalorder %s222_s22, %s222_s22 }
  0x2c   :  { %p229_p8 = por %p228_p7, %p227_p6 }
  0x2e   :  { %p230_p9 = pnand %p229_p8, %p223_p5 }
  0x30   :  { %233 = shalt.err (!%p230_p9)
}
  0x31   :  { %41 = dma.hbm_to_vmem [thread:$0]  %s333_s2, 128, %s39_s13, [#allocation7]  }
  0x32   :  { %244 = dma.done.wait [#allocation4], 128  }
  0x33   :  { %245 = vsyncadd [#allocation4], 4294967168 }
  0x34   :  { %246 = dma.done.wait [#allocation7], 256  }
  0x35   :  { %247 = vsyncadd [#allocation7], 4294967040  ;;  %v58_v0 = vld [vmem:[#allocation3] sm:$0xff]  ;;  %v59_v1 = vld [vmem:[#allocation6] sm:$0xff]  ;;  %s253_s2 = smov 0.0   ;;  %s234_s5 = scalar_lea.hbm %s335_s4, 16 }
  0x36   :  { %v60_v2 = vsub.f32 %v58_v0, %v59_v1  ;;  %v89_v3 = vld [vmem:[%s334_s3] sm:$0xff]  ;;  %v88_v18 = vld [vmem:[#allocation8] sm:$0xff]  ;;  %79 = sst [smem:[#allocation9 + $0x3]] %s253_s2  ;;  %p235_p10 = scmp.ne.s32.totalorder %s335_s4, %s234_s5 }
  0x37   :  { %v91_v4 = vand.u32 2147483647, %v89_v3  ;;  %v90_v15 = vmax.f32 %v89_v3, 0.0  ;;  %v106_v21 = vmul.f32 %v88_v18, %v88_v18  ;;  %81 = sst [smem:[#allocation9 + $0x4]] %s253_s2  ;;  %p238_p11 = scmp.lt.u32.totalorder %s234_s5, %s335_s4 }
  0x38   :  { %v61_v5 = vmul.f32 %v60_v2, %v60_v2  ;;  %83 = sst [smem:[#allocation9 + $0x5]] %s253_s2 }
  0x39   :  { %v92_v6 = vsub.f32 0.0, %v91_v4  ;;  %85 = sst [smem:[#allocation9 + $0x6]] %s253_s2  ;;  %p240_p12 = pnand %p238_p11, %p235_p10 }
  0x3a   :  { %62 = vadd.xlane.f32.xlu0 %v61_v5  ;;  %87 = sst [smem:[#allocation9 + $0x7]] %s253_s2 }
  0x3b   :  { %v93_v7 = vmul.f32 1.442695, %v92_v6 }
  0x3d   :  { %162 = vpow2.f32 %v93_v7 }
  0x47   :  { %v163_v8 = vpop.eup %162 }
  0x48   :  { %v95_v9 = vadd.f32 1.0, %v163_v8  ;;  %v98_v10 = vmul.f32 -0.5, %v163_v8  ;;  %v101_v12 = vand.u32 2147483647, %v163_v8 }
  0x4a   :  { %164 = vlog2.f32 %v95_v9  ;;  %v99_v11 = vadd.f32 1.0, %v98_v10  ;;  %vm102_vm0 = vcmp.lt.f32.partialorder %v101_v12, 0.0004427343 }
  0x4c   :  { %v100_v13 = vmul.f32 %v163_v8, %v99_v11 }
  0x54   :  { %v165_v14 = vpop.eup %164 }
  0x55   :  { %v97_v16 = vmul.f32 0.6931472, %v165_v14 }
  0x57   :  { %v103_v17 = vsel %vm102_vm0, %v100_v13, %v97_v16 }
  0x58   :  { %v104_v19 = vadd.f32 %v103_v17, %v90_v15 }
  0x5a   :  { %166 = vlog2.f32 %v104_v19  ;;  %v105_v20 = vmul.f32 %v104_v19, %v104_v19 }
  0x5c   :  { %v107_v22 = vadd.f32 %v106_v21, %v105_v20 }
  0x5e   :  { %v108_v23 = vmul.f32 0.5, %v107_v22 }
  0x64   :  { %v167_v24 = vpop.eup %166 }
  0x65   :  { %v110_v25 = vmul.f32 0.6931472, %v167_v24 }
  0x67   :  { %v111_v26 = vsub.f32 %v108_v23, %v110_v25 }
  0x69   :  { %v112_v27 = vadd.f32 -0.5, %v111_v26 }
  0x6b   :  { %121 = vadd.xlane.f32.xlu0 %v112_v27 }
  0xc7   :  { %v63_v28 = vpop.xlane.xlu0 %62 }
  0xc8   :  { %v64_v29 = vrot.slane %v63_v28, 4 }
  0xca   :  { %v65_v30 = vadd.f32 %v64_v29, %v63_v28 }
  0xcc   :  { %v66_v31 = vrot.slane %v65_v30, 2 }
  0xce   :  { %v67_v32 = vadd.f32 %v66_v31, %v65_v30 }
  0xd0   :  { %v68_v33 = vrot.slane %v67_v32, 1 }
  0xd2   :  { %v69_v34 = vadd.f32 %v68_v33, %v67_v32 }
  0xd4   :  { %153 = vpush %v69_v34 }
  0xf8   :  { %v122_v35 = vpop.xlane.xlu0 %121 }
  0xf9   :  { %v123_v36 = vrot.slane %v122_v35, 4 }
  0xfb   :  { %v124_v37 = vadd.f32 %v123_v36, %v122_v35 }
  0xfd   :  { %v125_v38 = vrot.slane %v124_v37, 2 }
  0xff   :  { %v126_v39 = vadd.f32 %v125_v38, %v124_v37 }
 0x101   :  { %v127_v40 = vrot.slane %v126_v39, 1 }
 0x103   :  { %v128_v41 = vadd.f32 %v127_v40, %v126_v39 }
 0x105   :  { %155 = vpush %v128_v41  ;;  %s154_s3 = spop %153 }
 0x106   :  { %s71_s25 = smul.f32 0.125, %s154_s3 }
 0x108   :  { %73 = sst [smem:[#allocation9 + $0x1]] %s71_s25 }
 0x136   :  { %s156_s26 = spop %155 }
 0x137   :  { %131 = sst [smem:[#allocation9 + $0x2]] %s156_s26  ;;  %s133_s27 = smul.f32 0.01, %s156_s26 }
 0x139   :  { %s134_s28 = sadd.f32 %s133_s27, %s71_s25 }
 0x13b   :  { %136 = sst [smem:[#allocation9]] %s134_s28 }
 0x13c   :  { %243 = shalt.err (!%p240_p12)
}
 0x13d   :  { %s254_s10 = smov [#allocation9]  }
 0x13e   :  { %144 = dma.smem_to_hbm %s254_s10, 16, %s335_s4, [#allocation5]  }
 0x13f   :  { %248 = dma.done.wait [#allocation5], 16  }
 0x140   :  { %249 = vsyncadd [#allocation5], 4294967280 }
 0x141   :  { %148 = sfence }
 0x142   :  { %149 = vsyncpa [#allocation4], 1 }
 0x143   :  { %150 = vsyncpa [#allocation7], 1 }
 0x144   :  { %151 = vsyncpa [#allocation5], 1 }

</bundles_post_ra>
